<compile_context>
chip_gen: v7x
topology: tpu7x:2x2x1
jax: 0.10.0
libtpu: 0.0.40
codegen_flags: <defaults>
</compile_context>

<pallas_src>
import jax
import jax.numpy as jnp
from jax.experimental import pallas as pl
from jax.experimental.pallas import tpu as pltpu


def _raloss_kernel(amax_ref, aorg_ref, loss_ref, vals_ref):
    # amax_ref / aorg_ref: (N_groups, B) f32 in VMEM
    # loss_ref: (1,) f32 in SMEM
    # vals_ref: (N_groups, B) f32 in VMEM (residual for the backward)
    batch = amax_ref.shape[1]
    # 10 / exp(a_max - a_org) == 10 * exp(a_org - a_max)   (exp -> EUP slot)
    vals = 10.0 * jnp.exp(aorg_ref[...] - amax_ref[...])
    vals_ref[...] = vals
    # per-group batch-mean then sum over groups == sum(vals) / B
    loss_ref[0] = jnp.sum(vals) * (1.0 / batch)


def _raloss_call(amax, aorg):
    n, b = amax.shape
    return pl.pallas_call(
        _raloss_kernel,
        out_shape=(
            jax.ShapeDtypeStruct((1,), jnp.float32),
            jax.ShapeDtypeStruct((n, b), jnp.float32),
        ),
        in_specs=[
            pl.BlockSpec(memory_space=pltpu.MemorySpace.VMEM),
            pl.BlockSpec(memory_space=pltpu.MemorySpace.VMEM),
        ],
        out_specs=(
            pl.BlockSpec(memory_space=pltpu.MemorySpace.SMEM),
            pl.BlockSpec(memory_space=pltpu.MemorySpace.VMEM),
        ),
    )(amax, aorg)


@jax.custom_vjp
def _raloss_dense(amax, aorg):
    loss, _ = _raloss_call(amax, aorg)
    return loss


def _raloss_fwd(amax, aorg):
    loss, vals = _raloss_call(amax, aorg)
    # residual = vals (already includes the factor 10); batch for the 1/B scale
    return loss, (vals, amax.shape[1])


def _raloss_bwd(res, g):
    vals, batch = res
    # loss = (1/B) * sum(vals), vals = 10*exp(aorg - amax)
    #   dL/daorg = +vals/B ; dL/damax = -vals/B      (no exp recompute)
    grad_org = vals * (g[0] / batch)
    return (-grad_org, grad_org)


_raloss_dense.defvjp(_raloss_fwd, _raloss_bwd)


def _to_dense(alphas):
    """Lists of (B,)/(B,1) arrays -> dense (N_groups, B) f32 (single stack)."""
    if isinstance(alphas, (list, tuple)):
        assert len(alphas) > 0
        rows = [jnp.reshape(jnp.asarray(a, jnp.float32), (-1,)) for a in alphas]
        batch = rows[0].shape[0]
        assert all(r.shape == (batch,) for r in rows), (
            "all groups must share the same batch size")
        return jnp.stack(rows)
    a = jnp.asarray(alphas, jnp.float32)
    assert a.ndim == 2
    return a


def ra_loss(alphas_max, alphas_org):
    """alphas_max / alphas_org: lists of (B,) or (B,1) arrays, or dense (N,B).

    Returns a shape-(1,) f32 array (matches the PyTorch shape-(1,) tensor).
    Differentiable via custom_vjp.
    """
    amax = _to_dense(alphas_max)
    aorg = _to_dense(alphas_org)
    assert amax.shape == aorg.shape
    return _raloss_dense(amax, aorg)


def _ra_loss_ref(alphas_max, alphas_org):
    """Pure-JAX reference mirroring the PyTorch loops exactly."""
    loss = 0.0
    batch_size = alphas_org[0].shape[0]
    for i in range(len(alphas_org)):
        loss_wt = 0.0
        for j in range(batch_size):
            loss_wt = loss_wt + 10.0 / jnp.exp(
                jnp.reshape(alphas_max[i], (-1,))[j]
                - jnp.reshape(alphas_org[i], (-1,))[j]
            )
        loss = loss + loss_wt / batch_size
    return loss


if __name__ == "__main__":
    key = jax.random.PRNGKey(0)
    n_groups = 3   # LipFD uses 3 attention groups
    batch = 2

    keys = jax.random.split(key, 2 * n_groups)
    # each list entry: per-group, per-batch scalar attention weight, shape (B, 1)
    alphas_max = [
        jax.random.uniform(keys[i], (batch, 1), dtype=jnp.float32)
        for i in range(n_groups)
    ]
    alphas_org = [
        jax.random.uniform(keys[n_groups + i], (batch, 1), dtype=jnp.float32)
        for i in range(n_groups)
    ]

    # forward
    loss = ra_loss(alphas_max, alphas_org)
    jax.block_until_ready(loss)
    ref = _ra_loss_ref(alphas_max, alphas_org)
    assert jnp.allclose(loss, ref, rtol=1e-5, atol=1e-5), (loss, ref)

    # backward (custom_vjp, no exp recompute) vs autodiff of the reference
    g_kernel = jax.grad(
        lambda am, ao: jnp.sum(ra_loss(am, ao)), argnums=(0, 1)
    )(alphas_max, alphas_org)
    g_ref = jax.grad(
        lambda am, ao: jnp.sum(_ra_loss_ref(am, ao)), argnums=(0, 1)
    )(alphas_max, alphas_org)
    for gk, gr in zip(
        jax.tree_util.tree_leaves(g_kernel), jax.tree_util.tree_leaves(g_ref)
    ):
        assert jnp.allclose(gk, gr, rtol=1e-5, atol=1e-5), (gk, gr)

    print("KERNEL_OK")
</pallas_src>

<mosaic_0001>
module attributes {stable_mosaic.version = 11 : i64} {
  func.func @_raloss_kernel(%arg0: memref<3x2xf32, #tpu.memory_space<vmem>>, %arg1: memref<3x2xf32, #tpu.memory_space<vmem>>, %arg2: memref<1xf32, #tpu.memory_space<smem>>, %arg3: memref<3x2xf32, #tpu.memory_space<vmem>>) attributes {dimension_semantics = [], scalar_prefetch = 0 : i64, scratch_operands = 0 : i64, tpu.core_type = #tpu.core_type<tc>} {
    %c0 = arith.constant 0 : index
    %c0_0 = arith.constant 0 : index
    %0 = vector.load %arg1[%c0, %c0_0] : memref<3x2xf32, #tpu.memory_space<vmem>>, vector<3x2xf32>
    %c0_1 = arith.constant 0 : index
    %c0_2 = arith.constant 0 : index
    %1 = vector.load %arg0[%c0_1, %c0_2] : memref<3x2xf32, #tpu.memory_space<vmem>>, vector<3x2xf32>
    %2 = arith.subf %0, %1 : vector<3x2xf32>
    %3 = math.exp %2 : vector<3x2xf32>
    %cst = arith.constant 1.000000e+01 : f32
    %4 = vector.broadcast %cst : f32 to vector<3x2xf32>
    %5 = arith.mulf %4, %3 : vector<3x2xf32>
    %c0_3 = arith.constant 0 : index
    %c0_4 = arith.constant 0 : index
    %6 = vector.load %arg3[%c0_3, %c0_4] : memref<3x2xf32, #tpu.memory_space<vmem>>, vector<3x2xf32>
    tpu.vector_store %arg3[%c0_3, %c0_4], %5 {strides = array<i32>} : memref<3x2xf32, #tpu.memory_space<vmem>>, vector<3x2xf32>,
    %7 = vector.shape_cast %5 : vector<3x2xf32> to vector<1x3x2xf32>
    %cst_5 = arith.constant dense<0.000000e+00> : vector<1xf32>
    %8 = vector.multi_reduction <add>, %7, %cst_5 [1, 2] : vector<1x3x2xf32> to vector<1xf32>
    %9 = vector.shape_cast %8 : vector<1xf32> to vector<1x1x1xf32>
    %10 = vector.extract %9[0, 0, 0] : f32 from vector<1x1x1xf32>
    %cst_6 = arith.constant 5.000000e-01 : f32
    %11 = arith.mulf %10, %cst_6 : f32
    %c0_7 = arith.constant 0 : index
    %12 = memref.load %arg2[%c0_7] : memref<1xf32, #tpu.memory_space<smem>>
    memref.store %11, %arg2[%c0_7] : memref<1xf32, #tpu.memory_space<smem>>
    return
  }
}

</mosaic_0001>

<bundles_post_ra>
// kernel: tpu_custom_call.1
= control target key start
LH: loop header
LB: loop body
LE: loop exit
PB: predicated region body
PF: predicated region fallthrough
CT: control target
= control target key end

     0   :  { %s111_s0 = inlined_call_operand.vmem [shape: f32[3,2], index: 0, kind: input, shape index: {}]   ;;  %s112_s1 = inlined_call_operand.vmem [shape: f32[3,2], index: 1, kind: input, shape index: {}]   ;;  %s113_s2 = inlined_call_operand.hbm [shape: f32[1], index: 2, kind: output, shape index: {0}]   ;;  %s114_s3 = inlined_call_operand.vmem [shape: f32[3,2], index: 3, kind: output, shape index: {1}]  }
   0x1   :  { %v14_v0 = vld [vmem:[%s112_s1] sm:$0x7] }
   0x2   :  { %v15_v1 = vld [vmem:[%s111_s0] sm:$0x7] }
   0x3   :  { %v16_v2 = vsub.f32 %v14_v0, %v15_v1 }
   0x4   :  { %9 = vsyncpa [#allocation3], 0  ;;  %vm20_vm0 = vcmask 10240   ;;  %s57_s20 = scalar_lea.hbm %s113_s2, 16 }
   0x5   :  { %v17_v3 = vmul.f32 1.442695, %v16_v2  ;;  %p58_p0 = scmp.ne.s32.totalorder %s113_s2, %s57_s20  ;;  %p61_p1 = scmp.lt.u32.totalorder %s57_s20, %s113_s2 }
   0x7   :  { %55 = vpow2.f32 %v17_v3  ;;  %p63_p2 = pnand %p61_p1, %p58_p0 }
  0x11   :  { %v56_v4 = vpop.eup %55 }
  0x12   :  { %v19_v5 = vmul.f32 10.0, %v56_v4 }
  0x14   :  { %21 = vst.msk [vmem:[%s114_s3] sm:$0x7] %vm20_vm0, %v19_v5  ;;  %v22_v6 = vsel %vm20_vm0, %v19_v5, 0.0 }
  0x15   :  { %23 = vadd.xlane.f32.xlu0 %v22_v6 }
  0xa2   :  { %v24_v7 = vpop.xlane.xlu0 %23 }
  0xa3   :  { %v25_v8 = vrot.slane %v24_v7, 4 }
  0xa5   :  { %v26_v9 = vadd.f32 %v25_v8, %v24_v7 }
  0xa7   :  { %v27_v10 = vrot.slane %v26_v9, 2 }
  0xa9   :  { %v28_v11 = vadd.f32 %v27_v10, %v26_v9 }
  0xab   :  { %v29_v12 = vrot.slane %v28_v11, 1 }
  0xad   :  { %v30_v13 = vadd.f32 %v29_v12, %v28_v11 }
  0xaf   :  { %52 = vpush %v30_v13 }
  0xe0   :  { %s53_s0 = spop %52 }
  0xe1   :  { %s32_s1 = smul.f32 0.5, %s53_s0 }
  0xe3   :  { %34 = sst [smem:[#allocation2]] %s32_s1 }
  0xe4   :  { %66 = shalt.err (!%p63_p2)
}
  0xe5   :  { %s69_s24 = smov [#allocation2]  }
  0xe6   :  { %42 = dma.smem_to_hbm %s69_s24, 16, %s113_s2, [#allocation3]  }
  0xe7   :  { %67 = dma.done.wait [#allocation3], 16  }
  0xe8   :  { %68 = vsyncadd [#allocation3], 4294967280 }
  0xe9   :  { %50 = sfence }
  0xea   :  { %51 = vsyncpa [#allocation3], 1 }

</bundles_post_ra>
